<compile_context>
chip_gen: v6e
topology: v6e:2x2x1
jax: 0.10.0
libtpu: 0.0.40
codegen_flags: <defaults>
</compile_context>

<pallas_src>
import functools

import jax
import jax.numpy as jnp
import numpy as np
from jax.experimental import pallas as pl
from jax.experimental.pallas import tpu as pltpu

LANE = 128


def _dice_kernel(*refs, nclass, binary, has_mask, needs_valid,
                 ts, sub, l_total, tiles_per_split):
    if has_mask:
        logits_ref, target_ref, mask_ref, out_ref, acc_ref = refs
    else:
        logits_ref, target_ref, out_ref, acc_ref = refs
        mask_ref = None

    l = pl.program_id(2)

    @pl.when(l == 0)
    def _():
        acc_ref[...] = jnp.zeros_like(acc_ref)

    if needs_valid:
        s = pl.program_id(1)
        # Unclamped base row: phantom (clamped) tiles get row indices >= R so
        # every pixel of them is marked invalid and contributes zero.
        tile_row0 = (s * tiles_per_split + l) * ts

    # Static sub-slab schedule covering the (ts, 128) block.
    chunks = []
    r = 0
    while r < ts:
        rs = min(sub, ts - r)
        chunks.append((r, rs))
        r += rs

    # Per-channel partial sums carried in registers across the unrolled loop;
    # only 2*nclass tiny VMEM read-modify-writes happen per grid step.
    acc_i = [jnp.zeros((1, LANE), jnp.float32) for _ in range(nclass)]
    acc_u = [jnp.zeros((1, LANE), jnp.float32) for _ in range(nclass)]

    for (r0, rs) in chunks:
        sl = slice(r0, r0 + rs)

        tgt = target_ref[0, 0, sl, :].astype(jnp.int32)     # (rs, 128)

        valid = None
        if needs_valid:
            rows = jax.lax.broadcasted_iota(jnp.int32, (rs, LANE), 0)
            cols = jax.lax.broadcasted_iota(jnp.int32, (rs, LANE), 1)
            pix = (tile_row0 + r0 + rows) * LANE + cols
            valid = pix < l_total                            # bool (rs, 128)

        # Combined per-pixel factor f = user-mask * validity (None -> 1.0).
        f = None
        if has_mask:
            eff = mask_ref[0, 0, sl, :].astype(jnp.float32)
            f = jnp.where(valid, eff, 0.0) if needs_valid else eff
        elif needs_valid:
            f = valid.astype(jnp.float32)

        # Channel probabilities.  pred(c) is consumed immediately per channel
        # so logits / exps / preds are never all live together.
        if binary:
            # torch path for C==1: p = sigmoid(x); pred = cat([1-p, p], dim=1)
            x = logits_ref[0, 0, sl, :].astype(jnp.float32)
            p1 = pl.reciprocal(1.0 + jnp.exp(-x), approx=True)
            if needs_valid:
                # Keep finite on padded / garbage rows (zeroed later via f).
                p1 = jnp.where(valid, p1, 0.5)

            def pred(c, _p1=p1):
                return _p1 if c == 1 else 1.0 - _p1
        else:
            xs = [logits_ref[0, c, sl, :].astype(jnp.float32)
                  for c in range(nclass)]
            m = xs[0]
            for c in range(1, nclass):
                m = jnp.maximum(m, xs[c])
            denom = None
            for c in range(nclass):
                e = jnp.exp(xs[c] - m)                       # EUP
                xs[c] = e                                    # overwrite: no 2nd list
                denom = e if denom is None else denom + e
            inv = pl.reciprocal(denom, approx=True)          # EUP

            def pred(c, _xs=xs, _inv=inv, _valid=valid):
                pc = _xs[c] * _inv
                if needs_valid:
                    # Keep finite on padded / garbage rows.
                    pc = jnp.where(_valid, pc, 0.0)
                return pc

        for c in range(nclass):
            pc = pred(c)
            oh = tgt == c
            if f is None:
                oh_f = oh.astype(jnp.float32)
                inter = pc * oh_f                            # pred * onehot
                union = pc + oh_f                            # pred + onehot
            else:
                oh_f = jnp.where(oh, f, 0.0)                 # onehot*mask*valid
                inter = pc * oh_f                            # pred*onehot*mask
                union = pc * f + oh_f                        # (pred+onehot)*mask
            # Sublane reduction per sub-slab (XLU slot, otherwise idle).
            acc_i[c] = acc_i[c] + jnp.sum(inter, axis=0, keepdims=True)
            acc_u[c] = acc_u[c] + jnp.sum(union, axis=0, keepdims=True)

    for c in range(nclass):
        acc_ref[c] += acc_i[c]
        acc_ref[nclass + c] += acc_u[c]

    @pl.when(l == pl.num_programs(2) - 1)
    def _():
        # Lane reduce + dice formula happen in the wrapper on the tiny
        # lane-dense (N, splits, 2C, 128) output.
        out_ref[0, 0] = jnp.sum(acc_ref[...], axis=1)        # (2C, 128)


class MaskDiceLossPallas:
    """Pallas equivalent of mask_DiceLoss (forward path)."""

    def __init__(self, nclass, class_weights=None, smooth=1e-5,
                 rows_per_tile=256, inner_rows=16, num_l_splits=1):
        self.smooth = float(smooth)
        # rows_per_tile * 128 pixels per grid step (default 32768): large DMA
        # granule.  inner_rows * 128 pixels per unrolled inner sub-slab: small
        # vreg working set.  Both must be multiples of 8 (sublane tiling).
        assert rows_per_tile % 8 == 0, "rows_per_tile must be a multiple of 8"
        assert inner_rows % 8 == 0, "inner_rows must be a multiple of 8"
        self.rows_per_tile = int(rows_per_tile)
        self.inner_rows = int(inner_rows)
        # Extra "parallel" L-split axis.  Default 1: on single-TensorCore
        # chips (v5e/v6e) it only costs phantom tiles + validity masking.
        # Set to 2 on v7x when N == 1 to keep both TensorCores busy.
        self.num_l_splits = max(1, int(num_l_splits))
        # class_weights is a registered (non-trainable) parameter in the torch
        # module but is never used in forward(); keep it for fidelity.
        if class_weights is None:
            self.class_weights = jnp.ones((1, nclass), jnp.float32)
        else:
            cw = np.asarray(class_weights, np.float32)
            assert nclass == cw.shape[0]
            self.class_weights = jnp.asarray(cw, jnp.float32)

    def __call__(self, logits, target, mask=None):
        N, C_in = int(logits.shape[0]), int(logits.shape[1])
        L = int(np.prod(logits.shape[2:]))
        binary = (C_in == 1)
        nclass = 2 if binary else C_in

        R = -(-L // LANE)                      # rows of 128 lanes
        Lp = R * LANE

        # Logits keep their incoming dtype (bf16 inputs stream at half the
        # bytes); the kernel upcasts to f32 for all math.
        logits = jnp.reshape(logits, (N, C_in, L))
        target = jnp.reshape(target, (N, 1, L))
        has_mask = mask is not None
        if has_mask:
            mask = jnp.reshape(mask, (N, 1, L))

        # Tiling decisions (needed before the dtype-shrink gates below).
        ts = self.rows_per_tile
        if R <= ts:
            ts = R                              # block == full row extent
        total_tiles = -(-R // ts)
        splits = max(1, min(self.num_l_splits, total_tiles))
        tiles_per_split = -(-total_tiles // splits)
        covered = splits * tiles_per_split * ts * LANE
        # NOTE: needs_valid MUST stay True whenever covered != L; the clamped
        # phantom tiles in in_idx rely on it to be zeroed out.
        needs_valid = covered != L
        has_phantom = splits * tiles_per_split != total_tiles

        # Side-stream byte shrink (kernel is HBM-bound on v5e/v6e): class ids
        # fit in int8, 0/1 masks are exact in bf16.  Gated on block shapes
        # that tile cleanly for the narrow dtypes ((32,128) i8 / (16,128) bf16).
        tgt_dt = jnp.int8 if (nclass <= 127 and ts % 32 == 0) else jnp.int32
        if target.dtype != tgt_dt:
            target = target.astype(tgt_dt)
        if has_mask and ts % 16 == 0 and \
                jnp.issubdtype(mask.dtype, jnp.floating) and \
                np.dtype(mask.dtype).itemsize >= 4:
            # TODO(synk): exact only for 0/1 masks; drop this cast if arbitrary
            # float mask weights must be preserved bit-exactly.
            mask = mask.astype(jnp.bfloat16)

        if Lp != L:
            # Rare column pad (L % 128 != 0); padded tail is masked in-kernel.
            pad = ((0, 0), (0, 0), (0, Lp - L))
            logits = jnp.pad(logits, pad)
            target = jnp.pad(target, pad)
            if has_mask:
                mask = jnp.pad(mask, pad)

        logits4 = jnp.reshape(logits, (N, C_in, R, LANE))
        target4 = jnp.reshape(target, (N, 1, R, LANE))
        if has_mask:
            mask4 = jnp.reshape(mask, (N, 1, R, LANE))

        sub = min(self.inner_rows, ts)

        def in_idx(i, s, l):
            rb = s * tiles_per_split + l
            if has_phantom:
                # Phantom trailing tiles (uneven split) re-read the last real
                # tile; their contribution is zeroed by the validity mask.
                rb = jnp.minimum(rb, total_tiles - 1)
            return (i, 0, rb, 0)

        in_specs = [
            pl.BlockSpec((1, C_in, ts, LANE), in_idx),
            pl.BlockSpec((1, 1, ts, LANE), in_idx),
        ]
        args = [logits4, target4]
        if has_mask:
            in_specs.append(pl.BlockSpec((1, 1, ts, LANE), in_idx))
            args.append(mask4)

        kernel = functools.partial(
            _dice_kernel, nclass=nclass, binary=binary, has_mask=has_mask,
            needs_valid=needs_valid, ts=ts, sub=sub, l_total=L,
            tiles_per_split=tiles_per_split)

        bytes_accessed = (
            N * C_in * Lp * np.dtype(logits4.dtype).itemsize
            + N * Lp * np.dtype(target4.dtype).itemsize
            + (N * Lp * np.dtype(mask4.dtype).itemsize if has_mask else 0)
            + N * splits * 2 * nclass * LANE * 4)
        cost = pl.CostEstimate(
            flops=int(N * L * nclass * 8),
            transcendentals=int(N * L * C_in),
            bytes_accessed=int(bytes_accessed))

        partial_sums = pl.pallas_call(
            kernel,
            out_shape=jax.ShapeDtypeStruct((N, splits, 2 * nclass, LANE),
                                           jnp.float32),
            grid_spec=pltpu.PrefetchScalarGridSpec(
                num_scalar_prefetch=0,
                grid=(N, splits, tiles_per_split),
                in_specs=in_specs,
                out_specs=pl.BlockSpec((1, 1, 2 * nclass, LANE),
                                       lambda i, s, l: (i, s, 0, 0)),
                scratch_shapes=[
                    pltpu.VMEM((2 * nclass, 1, LANE), jnp.float32),
                ],
            ),
            compiler_params=pltpu.CompilerParams(
                dimension_semantics=("parallel", "parallel", "arbitrary")),
            cost_estimate=cost,
        )(*args)

        # Tiny finish in plain JAX: lane + split reduce, dice, mean.
        sums = jnp.sum(partial_sums, axis=(1, 3))       # (N, 2*nclass)
        inter = sums[:, :nclass]
        union = sums[:, nclass:]
        dice = (2.0 * inter + self.smooth) / (union + self.smooth)
        return 1.0 - jnp.mean(dice)


def _reference(logits, target, mask, smooth):
    """Pure-JAX mirror of the torch forward for validation."""
    N, C = logits.shape[0], logits.shape[1]
    L = int(np.prod(logits.shape[2:]))
    lg = jnp.reshape(logits, (N, C, L)).astype(jnp.float32)
    tg = jnp.reshape(target, (N, 1, L)).astype(jnp.int32)
    if C == 1:
        p = jax.nn.sigmoid(lg)
        pred = jnp.concatenate([1.0 - p, p], axis=1)
        C = 2
    else:
        pred = jax.nn.softmax(lg, axis=1)
    one_hot = (jnp.arange(C, dtype=jnp.int32)[None, :, None] == tg).astype(jnp.float32)
    inter = pred * one_hot
    union = pred + one_hot
    if mask is not None:
        mk = jnp.reshape(mask, (N, 1, L)).astype(jnp.float32)
        inter = inter * mk
        union = union * mk
    inter = inter.sum(2)
    union = union.sum(2)
    dice = (2.0 * inter + smooth) / (union + smooth)
    return 1.0 - dice.mean()


if __name__ == "__main__":
    key = jax.random.PRNGKey(0)
    k1, k2, k3, k4, k5, k6, k7, k8 = jax.random.split(key, 8)

    # approx reciprocal in softmax / sigmoid contributes ~1e-4 relative error.
    tol = dict(rtol=1e-3, atol=1e-3)

    # 1) Multi-class case (N=2, C=4, 16x16 spatial), with and without mask.
    N, C, H, W = 2, 4, 16, 16
    logits = jax.random.normal(k1, (N, C, H, W), jnp.float32)
    target = jax.random.randint(k2, (N, 1, H, W), 0, C).astype(jnp.int32)
    mask = (jax.random.uniform(k3, (N, 1, H, W)) > 0.3).astype(jnp.float32)

    loss_mod = MaskDiceLossPallas(nclass=C, smooth=1e-5)

    out_masked = jax.block_until_ready(loss_mod(logits, target, mask))
    ref_masked = jax.block_until_ready(_reference(logits, target, mask, 1e-5))
    np.testing.assert_allclose(np.asarray(out_masked), np.asarray(ref_masked), **tol)

    out_plain = jax.block_until_ready(loss_mod(logits, target, None))
    ref_plain = jax.block_until_ready(_reference(logits, target, None, 1e-5))
    np.testing.assert_allclose(np.asarray(out_plain), np.asarray(ref_plain), **tol)

    # 2) Binary (C==1) case: in-kernel sigmoid, no zero-channel concat in HBM.
    logits1 = jax.random.normal(k4, (N, 1, H, W), jnp.float32)
    target1 = jax.random.randint(k5, (N, 1, H, W), 0, 2).astype(jnp.int32)
    loss_bin = MaskDiceLossPallas(nclass=2, smooth=1e-5)
    out_bin = jax.block_until_ready(loss_bin(logits1, target1, mask))
    ref_bin = jax.block_until_ready(_reference(logits1, target1, mask, 1e-5))
    np.testing.assert_allclose(np.asarray(out_bin), np.asarray(ref_bin), **tol)

    # 3) Tail case: L = 10*10 = 100 not a multiple of 128 -> in-kernel
    #    validity mask guards the padded columns.
    H2 = W2 = 10
    logits_t = jax.random.normal(k1, (N, C, H2, W2), jnp.float32)
    target_t = jax.random.randint(k2, (N, 1, H2, W2), 0, C).astype(jnp.int32)
    out_t = jax.block_until_ready(loss_mod(logits_t, target_t, None))
    ref_t = jax.block_until_ready(_reference(logits_t, target_t, None, 1e-5))
    np.testing.assert_allclose(np.asarray(out_t), np.asarray(ref_t), **tol)

    # 4) Larger case (N=2, C=3, 192x192, masked): exercises the int8 target /
    #    bf16 mask streams, the 256-row tile with the unrolled inner loop,
    #    multiple accumulation steps, and the partial last row-tile (garbage
    #    rows masked by the validity path).
    N3, C3, H3, W3 = 2, 3, 192, 192
    logits_b = jax.random.normal(k6, (N3, C3, H3, W3), jnp.float32)
    target_b = jax.random.randint(k7, (N3, 1, H3, W3), 0, C3).astype(jnp.int32)
    mask_b = (jax.random.uniform(k8, (N3, 1, H3, W3)) > 0.5).astype(jnp.float32)
    loss_big = MaskDiceLossPallas(nclass=C3, smooth=1e-5)
    out_b = jax.block_until_ready(loss_big(logits_b, target_b, mask_b))
    ref_b = jax.block_until_ready(_reference(logits_b, target_b, mask_b, 1e-5))
    np.testing.assert_allclose(np.asarray(out_b), np.asarray(ref_b), **tol)

    out_b2 = jax.block_until_ready(loss_big(logits_b, target_b, None))
    ref_b2 = jax.block_until_ready(_reference(logits_b, target_b, None, 1e-5))
    np.testing.assert_allclose(np.asarray(out_b2), np.asarray(ref_b2), **tol)

    print("KERNEL_OK")
</pallas_src>

<mosaic_0001>
module attributes {stable_mosaic.version = 11 : i64} {
  func.func @_dice_kernel(%arg0: i32, %arg1: i32, %arg2: i32, %arg3: memref<1x4x2x128xf32, #tpu.memory_space<vmem>>, %arg4: memref<1x1x2x128xi32, #tpu.memory_space<vmem>>, %arg5: memref<1x1x2x128xf32, #tpu.memory_space<vmem>>, %arg6: memref<1x1x8x128xf32, #tpu.memory_space<vmem>>, %arg7: memref<8x1x128xf32, #tpu.memory_space<vmem>>) attributes {dimension_semantics = [#tpu.dimension_semantics<parallel>, #tpu.dimension_semantics<parallel>, #tpu.dimension_semantics<arbitrary>], iteration_bounds = array<i64: 2, 1, 1>, scalar_prefetch = 0 : i64, scratch_operands = 1 : i64, tpu.core_type = #tpu.core_type<tc>, window_params = [{transform_indices = @transform_0, window_bounds = array<i64: 1, 4, 2, 128>}, {transform_indices = @transform_1, window_bounds = array<i64: 1, 1, 2, 128>}, {transform_indices = @transform_2, window_bounds = array<i64: 1, 1, 2, 128>}, {transform_indices = @transform_3, window_bounds = array<i64: 1, 1, 8, 128>}]} {
    %c0_i32 = arith.constant 0 : i32
    %0 = arith.cmpi eq, %arg2, %c0_i32 : i32
    %1 = arith.extui %0 : i1 to i32
    %c0_i32_0 = arith.constant 0 : i32
    %2 = arith.cmpi ne, %1, %c0_i32_0 : i32
    scf.if %2 {
      %cst_87 = arith.constant 0.000000e+00 : f32
      %145 = vector.broadcast %cst_87 : f32 to vector<8x1x128xf32>
      %c0_88 = arith.constant 0 : index
      %c0_89 = arith.constant 0 : index
      %c0_90 = arith.constant 0 : index
      %146 = vector.load %arg7[%c0_88, %c0_89, %c0_90] : memref<8x1x128xf32, #tpu.memory_space<vmem>>, vector<8x1x128xf32>
      tpu.vector_store %arg7[%c0_88, %c0_89, %c0_90], %145 {strides = array<i32>} : memref<8x1x128xf32, #tpu.memory_space<vmem>>, vector<8x1x128xf32>,
    } else {
    }
    %cst = arith.constant 0.000000e+00 : f32
    %3 = vector.broadcast %cst : f32 to vector<1x128xf32>
    %cst_1 = arith.constant 0.000000e+00 : f32
    %4 = vector.broadcast %cst_1 : f32 to vector<1x128xf32>
    %cst_2 = arith.constant 0.000000e+00 : f32
    %5 = vector.broadcast %cst_2 : f32 to vector<1x128xf32>
    %cst_3 = arith.constant 0.000000e+00 : f32
    %6 = vector.broadcast %cst_3 : f32 to vector<1x128xf32>
    %cst_4 = arith.constant 0.000000e+00 : f32
    %7 = vector.broadcast %cst_4 : f32 to vector<1x128xf32>
    %cst_5 = arith.constant 0.000000e+00 : f32
    %8 = vector.broadcast %cst_5 : f32 to vector<1x128xf32>
    %cst_6 = arith.constant 0.000000e+00 : f32
    %9 = vector.broadcast %cst_6 : f32 to vector<1x128xf32>
    %cst_7 = arith.constant 0.000000e+00 : f32
    %10 = vector.broadcast %cst_7 : f32 to vector<1x128xf32>
    %c0 = arith.constant 0 : index
    %c0_8 = arith.constant 0 : index
    %c0_9 = arith.constant 0 : index
    %c0_10 = arith.constant 0 : index
    %11 = vector.load %arg4[%c0, %c0_8, %c0_9, %c0_10] : memref<1x1x2x128xi32, #tpu.memory_space<vmem>>, vector<1x1x2x128xi32>
    %12 = vector.shape_cast %11 : vector<1x1x2x128xi32> to vector<2x128xi32>
    %c0_11 = arith.constant 0 : index
    %c0_12 = arith.constant 0 : index
    %c0_13 = arith.constant 0 : index
    %c0_14 = arith.constant 0 : index
    %13 = vector.load %arg5[%c0_11, %c0_12, %c0_13, %c0_14] : memref<1x1x2x128xf32, #tpu.memory_space<vmem>>, vector<1x1x2x128xf32>
    %14 = vector.shape_cast %13 : vector<1x1x2x128xf32> to vector<2x128xf32>
    %c0_15 = arith.constant 0 : index
    %c0_16 = arith.constant 0 : index
    %c0_17 = arith.constant 0 : index
    %c0_18 = arith.constant 0 : index
    %15 = vector.load %arg3[%c0_15, %c0_16, %c0_17, %c0_18] : memref<1x4x2x128xf32, #tpu.memory_space<vmem>>, vector<1x1x2x128xf32>
    %16 = vector.shape_cast %15 : vector<1x1x2x128xf32> to vector<2x128xf32>
    %c0_19 = arith.constant 0 : index
    %c1 = arith.constant 1 : index
    %c0_20 = arith.constant 0 : index
    %c0_21 = arith.constant 0 : index
    %17 = vector.load %arg3[%c0_19, %c1, %c0_20, %c0_21] : memref<1x4x2x128xf32, #tpu.memory_space<vmem>>, vector<1x1x2x128xf32>
    %18 = vector.shape_cast %17 : vector<1x1x2x128xf32> to vector<2x128xf32>
    %c0_22 = arith.constant 0 : index
    %c2 = arith.constant 2 : index
    %c0_23 = arith.constant 0 : index
    %c0_24 = arith.constant 0 : index
    %19 = vector.load %arg3[%c0_22, %c2, %c0_23, %c0_24] : memref<1x4x2x128xf32, #tpu.memory_space<vmem>>, vector<1x1x2x128xf32>
    %20 = vector.shape_cast %19 : vector<1x1x2x128xf32> to vector<2x128xf32>
    %c0_25 = arith.constant 0 : index
    %c3 = arith.constant 3 : index
    %c0_26 = arith.constant 0 : index
    %c0_27 = arith.constant 0 : index
    %21 = vector.load %arg3[%c0_25, %c3, %c0_26, %c0_27] : memref<1x4x2x128xf32, #tpu.memory_space<vmem>>, vector<1x1x2x128xf32>
    %22 = vector.shape_cast %21 : vector<1x1x2x128xf32> to vector<2x128xf32>
    %23 = arith.maximumf %16, %18 : vector<2x128xf32>
    %24 = arith.maximumf %23, %20 : vector<2x128xf32>
    %25 = arith.maximumf %24, %22 : vector<2x128xf32>
    %26 = arith.subf %16, %25 : vector<2x128xf32>
    %27 = math.exp %26 : vector<2x128xf32>
    %28 = arith.subf %18, %25 : vector<2x128xf32>
    %29 = math.exp %28 : vector<2x128xf32>
    %30 = arith.addf %27, %29 : vector<2x128xf32>
    %31 = arith.subf %20, %25 : vector<2x128xf32>
    %32 = math.exp %31 : vector<2x128xf32>
    %33 = arith.addf %30, %32 : vector<2x128xf32>
    %34 = arith.subf %22, %25 : vector<2x128xf32>
    %35 = math.exp %34 : vector<2x128xf32>
    %36 = arith.addf %33, %35 : vector<2x128xf32>
    %37 = tpu.reciprocal %36 {approx = true} : vector<2x128xf32> -> vector<2x128xf32>
    %38 = arith.mulf %27, %37 : vector<2x128xf32>
    %c0_i32_28 = arith.constant 0 : i32
    %39 = vector.broadcast %c0_i32_28 : i32 to vector<2x128xi32>
    %40 = arith.cmpi eq, %12, %39 : vector<2x128xi32>
    %cst_29 = arith.constant 0.000000e+00 : f32
    %41 = vector.broadcast %cst_29 : f32 to vector<2x128xf32>
    %42 = arith.select %40, %14, %41 : vector<2x128xi1>, vector<2x128xf32>
    %43 = arith.mulf %38, %42 : vector<2x128xf32>
    %44 = arith.mulf %38, %14 : vector<2x128xf32>
    %45 = arith.addf %44, %42 : vector<2x128xf32>
    %cst_30 = arith.constant dense<0.000000e+00> : vector<128xf32>
    %46 = vector.multi_reduction <add>, %43, %cst_30 [0] : vector<2x128xf32> to vector<128xf32>
    %47 = vector.shape_cast %46 : vector<128xf32> to vector<1x128xf32>
    %48 = arith.addf %3, %47 : vector<1x128xf32>
    %cst_31 = arith.constant dense<0.000000e+00> : vector<128xf32>
    %49 = vector.multi_reduction <add>, %45, %cst_31 [0] : vector<2x128xf32> to vector<128xf32>
    %50 = vector.shape_cast %49 : vector<128xf32> to vector<1x128xf32>
    %51 = arith.addf %7, %50 : vector<1x128xf32>
    %52 = arith.mulf %29, %37 : vector<2x128xf32>
    %c1_i32 = arith.constant 1 : i32
    %53 = vector.broadcast %c1_i32 : i32 to vector<2x128xi32>
    %54 = arith.cmpi eq, %12, %53 : vector<2x128xi32>
    %cst_32 = arith.constant 0.000000e+00 : f32
    %55 = vector.broadcast %cst_32 : f32 to vector<2x128xf32>
    %56 = arith.select %54, %14, %55 : vector<2x128xi1>, vector<2x128xf32>
    %57 = arith.mulf %52, %56 : vector<2x128xf32>
    %58 = arith.mulf %52, %14 : vector<2x128xf32>
    %59 = arith.addf %58, %56 : vector<2x128xf32>
    %cst_33 = arith.constant dense<0.000000e+00> : vector<128xf32>
    %60 = vector.multi_reduction <add>, %57, %cst_33 [0] : vector<2x128xf32> to vector<128xf32>
    %61 = vector.shape_cast %60 : vector<128xf32> to vector<1x128xf32>
    %62 = arith.addf %4, %61 : vector<1x128xf32>
    %cst_34 = arith.constant dense<0.000000e+00> : vector<128xf32>
    %63 = vector.multi_reduction <add>, %59, %cst_34 [0] : vector<2x128xf32> to vector<128xf32>
    %64 = vector.shape_cast %63 : vector<128xf32> to vector<1x128xf32>
    %65 = arith.addf %8, %64 : vector<1x128xf32>
    %66 = arith.mulf %32, %37 : vector<2x128xf32>
    %c2_i32 = arith.constant 2 : i32
    %67 = vector.broadcast %c2_i32 : i32 to vector<2x128xi32>
    %68 = arith.cmpi eq, %12, %67 : vector<2x128xi32>
    %cst_35 = arith.constant 0.000000e+00 : f32
    %69 = vector.broadcast %cst_35 : f32 to vector<2x128xf32>
    %70 = arith.select %68, %14, %69 : vector<2x128xi1>, vector<2x128xf32>
    %71 = arith.mulf %66, %70 : vector<2x128xf32>
    %72 = arith.mulf %66, %14 : vector<2x128xf32>
    %73 = arith.addf %72, %70 : vector<2x128xf32>
    %cst_36 = arith.constant dense<0.000000e+00> : vector<128xf32>
    %74 = vector.multi_reduction <add>, %71, %cst_36 [0] : vector<2x128xf32> to vector<128xf32>
    %75 = vector.shape_cast %74 : vector<128xf32> to vector<1x128xf32>
    %76 = arith.addf %5, %75 : vector<1x128xf32>
    %cst_37 = arith.constant dense<0.000000e+00> : vector<128xf32>
    %77 = vector.multi_reduction <add>, %73, %cst_37 [0] : vector<2x128xf32> to vector<128xf32>
    %78 = vector.shape_cast %77 : vector<128xf32> to vector<1x128xf32>
    %79 = arith.addf %9, %78 : vector<1x128xf32>
    %80 = arith.mulf %35, %37 : vector<2x128xf32>
    %c3_i32 = arith.constant 3 : i32
    %81 = vector.broadcast %c3_i32 : i32 to vector<2x128xi32>
    %82 = arith.cmpi eq, %12, %81 : vector<2x128xi32>
    %cst_38 = arith.constant 0.000000e+00 : f32
    %83 = vector.broadcast %cst_38 : f32 to vector<2x128xf32>
    %84 = arith.select %82, %14, %83 : vector<2x128xi1>, vector<2x128xf32>
    %85 = arith.mulf %80, %84 : vector<2x128xf32>
    %86 = arith.mulf %80, %14 : vector<2x128xf32>
    %87 = arith.addf %86, %84 : vector<2x128xf32>
    %cst_39 = arith.constant dense<0.000000e+00> : vector<128xf32>
    %88 = vector.multi_reduction <add>, %85, %cst_39 [0] : vector<2x128xf32> to vector<128xf32>
    %89 = vector.shape_cast %88 : vector<128xf32> to vector<1x128xf32>
    %90 = arith.addf %6, %89 : vector<1x128xf32>
    %cst_40 = arith.constant dense<0.000000e+00> : vector<128xf32>
    %91 = vector.multi_reduction <add>, %87, %cst_40 [0] : vector<2x128xf32> to vector<128xf32>
    %92 = vector.shape_cast %91 : vector<128xf32> to vector<1x128xf32>
    %93 = arith.addf %10, %92 : vector<1x128xf32>
    %c0_41 = arith.constant 0 : index
    %c0_42 = arith.constant 0 : index
    %c0_43 = arith.constant 0 : index
    %94 = vector.load %arg7[%c0_41, %c0_42, %c0_43] : memref<8x1x128xf32, #tpu.memory_space<vmem>>, vector<1x1x128xf32>
    %95 = vector.shape_cast %94 : vector<1x1x128xf32> to vector<1x128xf32>
    %96 = arith.addf %95, %48 : vector<1x128xf32>
    %c0_44 = arith.constant 0 : index
    %c0_45 = arith.constant 0 : index
    %c0_46 = arith.constant 0 : index
    %97 = vector.load %arg7[%c0_44, %c0_45, %c0_46] : memref<8x1x128xf32, #tpu.memory_space<vmem>>, vector<1x1x128xf32>
    %98 = vector.shape_cast %97 : vector<1x1x128xf32> to vector<1x128xf32>
    %99 = vector.shape_cast %96 : vector<1x128xf32> to vector<1x1x128xf32>
    tpu.vector_store %arg7[%c0_44, %c0_45, %c0_46], %99 {strides = array<i32>} : memref<8x1x128xf32, #tpu.memory_space<vmem>>, vector<1x1x128xf32>,
    %c4 = arith.constant 4 : index
    %c0_47 = arith.constant 0 : index
    %c0_48 = arith.constant 0 : index
    %100 = vector.load %arg7[%c4, %c0_47, %c0_48] : memref<8x1x128xf32, #tpu.memory_space<vmem>>, vector<1x1x128xf32>
    %101 = vector.shape_cast %100 : vector<1x1x128xf32> to vector<1x128xf32>
    %102 = arith.addf %101, %51 : vector<1x128xf32>
    %c4_49 = arith.constant 4 : index
    %c0_50 = arith.constant 0 : index
    %c0_51 = arith.constant 0 : index
    %103 = vector.load %arg7[%c4_49, %c0_50, %c0_51] : memref<8x1x128xf32, #tpu.memory_space<vmem>>, vector<1x1x128xf32>
    %104 = vector.shape_cast %103 : vector<1x1x128xf32> to vector<1x128xf32>
    %105 = vector.shape_cast %102 : vector<1x128xf32> to vector<1x1x128xf32>
    tpu.vector_store %arg7[%c4_49, %c0_50, %c0_51], %105 {strides = array<i32>} : memref<8x1x128xf32, #tpu.memory_space<vmem>>, vector<1x1x128xf32>,
    %c1_52 = arith.constant 1 : index
    %c0_53 = arith.constant 0 : index
    %c0_54 = arith.constant 0 : index
    %106 = vector.load %arg7[%c1_52, %c0_53, %c0_54] : memref<8x1x128xf32, #tpu.memory_space<vmem>>, vector<1x1x128xf32>
    %107 = vector.shape_cast %106 : vector<1x1x128xf32> to vector<1x128xf32>
    %108 = arith.addf %107, %62 : vector<1x128xf32>
    %c1_55 = arith.constant 1 : index
    %c0_56 = arith.constant 0 : index
    %c0_57 = arith.constant 0 : index
    %109 = vector.load %arg7[%c1_55, %c0_56, %c0_57] : memref<8x1x128xf32, #tpu.memory_space<vmem>>, vector<1x1x128xf32>
    %110 = vector.shape_cast %109 : vector<1x1x128xf32> to vector<1x128xf32>
    %111 = vector.shape_cast %108 : vector<1x128xf32> to vector<1x1x128xf32>
    tpu.vector_store %arg7[%c1_55, %c0_56, %c0_57], %111 {strides = array<i32>} : memref<8x1x128xf32, #tpu.memory_space<vmem>>, vector<1x1x128xf32>,
    %c5 = arith.constant 5 : index
    %c0_58 = arith.constant 0 : index
    %c0_59 = arith.constant 0 : index
    %112 = vector.load %arg7[%c5, %c0_58, %c0_59] : memref<8x1x128xf32, #tpu.memory_space<vmem>>, vector<1x1x128xf32>
    %113 = vector.shape_cast %112 : vector<1x1x128xf32> to vector<1x128xf32>
    %114 = arith.addf %113, %65 : vector<1x128xf32>
    %c5_60 = arith.constant 5 : index
    %c0_61 = arith.constant 0 : index
    %c0_62 = arith.constant 0 : index
    %115 = vector.load %arg7[%c5_60, %c0_61, %c0_62] : memref<8x1x128xf32, #tpu.memory_space<vmem>>, vector<1x1x128xf32>
    %116 = vector.shape_cast %115 : vector<1x1x128xf32> to vector<1x128xf32>
    %117 = vector.shape_cast %114 : vector<1x128xf32> to vector<1x1x128xf32>
    tpu.vector_store %arg7[%c5_60, %c0_61, %c0_62], %117 {strides = array<i32>} : memref<8x1x128xf32, #tpu.memory_space<vmem>>, vector<1x1x128xf32>,
    %c2_63 = arith.constant 2 : index
    %c0_64 = arith.constant 0 : index
    %c0_65 = arith.constant 0 : index
    %118 = vector.load %arg7[%c2_63, %c0_64, %c0_65] : memref<8x1x128xf32, #tpu.memory_space<vmem>>, vector<1x1x128xf32>
    %119 = vector.shape_cast %118 : vector<1x1x128xf32> to vector<1x128xf32>
    %120 = arith.addf %119, %76 : vector<1x128xf32>
    %c2_66 = arith.constant 2 : index
    %c0_67 = arith.constant 0 : index
    %c0_68 = arith.constant 0 : index
    %121 = vector.load %arg7[%c2_66, %c0_67, %c0_68] : memref<8x1x128xf32, #tpu.memory_space<vmem>>, vector<1x1x128xf32>
    %122 = vector.shape_cast %121 : vector<1x1x128xf32> to vector<1x128xf32>
    %123 = vector.shape_cast %120 : vector<1x128xf32> to vector<1x1x128xf32>
    tpu.vector_store %arg7[%c2_66, %c0_67, %c0_68], %123 {strides = array<i32>} : memref<8x1x128xf32, #tpu.memory_space<vmem>>, vector<1x1x128xf32>,
    %c6 = arith.constant 6 : index
    %c0_69 = arith.constant 0 : index
    %c0_70 = arith.constant 0 : index
    %124 = vector.load %arg7[%c6, %c0_69, %c0_70] : memref<8x1x128xf32, #tpu.memory_space<vmem>>, vector<1x1x128xf32>
    %125 = vector.shape_cast %124 : vector<1x1x128xf32> to vector<1x128xf32>
    %126 = arith.addf %125, %79 : vector<1x128xf32>
    %c6_71 = arith.constant 6 : index
    %c0_72 = arith.constant 0 : index
    %c0_73 = arith.constant 0 : index
    %127 = vector.load %arg7[%c6_71, %c0_72, %c0_73] : memref<8x1x128xf32, #tpu.memory_space<vmem>>, vector<1x1x128xf32>
    %128 = vector.shape_cast %127 : vector<1x1x128xf32> to vector<1x128xf32>
    %129 = vector.shape_cast %126 : vector<1x128xf32> to vector<1x1x128xf32>
    tpu.vector_store %arg7[%c6_71, %c0_72, %c0_73], %129 {strides = array<i32>} : memref<8x1x128xf32, #tpu.memory_space<vmem>>, vector<1x1x128xf32>,
    %c3_74 = arith.constant 3 : index
    %c0_75 = arith.constant 0 : index
    %c0_76 = arith.constant 0 : index
    %130 = vector.load %arg7[%c3_74, %c0_75, %c0_76] : memref<8x1x128xf32, #tpu.memory_space<vmem>>, vector<1x1x128xf32>
    %131 = vector.shape_cast %130 : vector<1x1x128xf32> to vector<1x128xf32>
    %132 = arith.addf %131, %90 : vector<1x128xf32>
    %c3_77 = arith.constant 3 : index
    %c0_78 = arith.constant 0 : index
    %c0_79 = arith.constant 0 : index
    %133 = vector.load %arg7[%c3_77, %c0_78, %c0_79] : memref<8x1x128xf32, #tpu.memory_space<vmem>>, vector<1x1x128xf32>
    %134 = vector.shape_cast %133 : vector<1x1x128xf32> to vector<1x128xf32>
    %135 = vector.shape_cast %132 : vector<1x128xf32> to vector<1x1x128xf32>
    tpu.vector_store %arg7[%c3_77, %c0_78, %c0_79], %135 {strides = array<i32>} : memref<8x1x128xf32, #tpu.memory_space<vmem>>, vector<1x1x128xf32>,
    %c7 = arith.constant 7 : index
    %c0_80 = arith.constant 0 : index
    %c0_81 = arith.constant 0 : index
    %136 = vector.load %arg7[%c7, %c0_80, %c0_81] : memref<8x1x128xf32, #tpu.memory_space<vmem>>, vector<1x1x128xf32>
    %137 = vector.shape_cast %136 : vector<1x1x128xf32> to vector<1x128xf32>
    %138 = arith.addf %137, %93 : vector<1x128xf32>
    %c7_82 = arith.constant 7 : index
    %c0_83 = arith.constant 0 : index
    %c0_84 = arith.constant 0 : index
    %139 = vector.load %arg7[%c7_82, %c0_83, %c0_84] : memref<8x1x128xf32, #tpu.memory_space<vmem>>, vector<1x1x128xf32>
    %140 = vector.shape_cast %139 : vector<1x1x128xf32> to vector<1x128xf32>
    %141 = vector.shape_cast %138 : vector<1x128xf32> to vector<1x1x128xf32>
    tpu.vector_store %arg7[%c7_82, %c0_83, %c0_84], %141 {strides = array<i32>} : memref<8x1x128xf32, #tpu.memory_space<vmem>>, vector<1x1x128xf32>,
    %c0_i32_85 = arith.constant 0 : i32
    %142 = arith.cmpi eq, %arg2, %c0_i32_85 : i32
    %143 = arith.extui %142 : i1 to i32
    %c0_i32_86 = arith.constant 0 : i32
    %144 = arith.cmpi ne, %143, %c0_i32_86 : i32
    scf.if %144 {
      %c0_87 = arith.constant 0 : index
      %c0_88 = arith.constant 0 : index
      %c0_89 = arith.constant 0 : index
      %145 = vector.load %arg7[%c0_87, %c0_88, %c0_89] : memref<8x1x128xf32, #tpu.memory_space<vmem>>, vector<8x1x128xf32>
      %cst_90 = arith.constant dense<0.000000e+00> : vector<8x128xf32>
      %146 = vector.multi_reduction <add>, %145, %cst_90 [1] : vector<8x1x128xf32> to vector<8x128xf32>
      %c0_91 = arith.constant 0 : index
      %c0_92 = arith.constant 0 : index
      %c0_93 = arith.constant 0 : index
      %c0_94 = arith.constant 0 : index
      %147 = vector.load %arg6[%c0_91, %c0_92, %c0_93, %c0_94] : memref<1x1x8x128xf32, #tpu.memory_space<vmem>>, vector<1x1x8x128xf32>
      %148 = vector.shape_cast %147 : vector<1x1x8x128xf32> to vector<8x128xf32>
      %149 = vector.shape_cast %146 : vector<8x128xf32> to vector<1x1x8x128xf32>
      tpu.vector_store %arg6[%c0_91, %c0_92, %c0_93, %c0_94], %149 {strides = array<i32>} : memref<1x1x8x128xf32, #tpu.memory_space<vmem>>, vector<1x1x8x128xf32>,
    } else {
    }
    return
  }
  func.func @transform_0(%arg0: i32, %arg1: i32, %arg2: i32) -> (i32, i32, i32, i32) {
    %c1_i32 = arith.constant 1 : i32
    %0 = arith.muli %arg1, %c1_i32 : i32
    %1 = arith.addi %0, %arg2 : i32
    %c0_i32 = arith.constant 0 : i32
    %c0_i32_0 = arith.constant 0 : i32
    %c0_i32_1 = arith.constant 0 : i32
    return %arg0, %c0_i32, %1, %c0_i32_0 : i32, i32, i32, i32
  }
  func.func @transform_1(%arg0: i32, %arg1: i32, %arg2: i32) -> (i32, i32, i32, i32) {
    %c1_i32 = arith.constant 1 : i32
    %0 = arith.muli %arg1, %c1_i32 : i32
    %1 = arith.addi %0, %arg2 : i32
    %c0_i32 = arith.constant 0 : i32
    %c0_i32_0 = arith.constant 0 : i32
    %c0_i32_1 = arith.constant 0 : i32
    return %arg0, %c0_i32, %1, %c0_i32_0 : i32, i32, i32, i32
  }
  func.func @transform_2(%arg0: i32, %arg1: i32, %arg2: i32) -> (i32, i32, i32, i32) {
    %c1_i32 = arith.constant 1 : i32
    %0 = arith.muli %arg1, %c1_i32 : i32
    %1 = arith.addi %0, %arg2 : i32
    %c0_i32 = arith.constant 0 : i32
    %c0_i32_0 = arith.constant 0 : i32
    %c0_i32_1 = arith.constant 0 : i32
    return %arg0, %c0_i32, %1, %c0_i32_0 : i32, i32, i32, i32
  }
  func.func @transform_3(%arg0: i32, %arg1: i32, %arg2: i32) -> (i32, i32, i32, i32) {
    %c0_i32 = arith.constant 0 : i32
    %c0_i32_0 = arith.constant 0 : i32
    %c0_i32_1 = arith.constant 0 : i32
    return %arg0, %arg1, %c0_i32, %c0_i32_0 : i32, i32, i32, i32
  }
}

</mosaic_0001>

<bundles_post_ra>
// kernel: tpu_custom_call.1
= control target key start
LH: loop header
LB: loop body
LE: loop exit
PB: predicated region body
PF: predicated region fallthrough
CT: control target
= control target key end

     0   :  { %s1201_s0 = inlined_call_operand.hbm [shape: f32[2,4,2,128], index: 0, kind: input, shape index: {}]   ;;  %s1202_s1 = inlined_call_operand.hbm [shape: s32[2,1,2,128], index: 1, kind: input, shape index: {}]   ;;  %s1203_s2 = inlined_call_operand.hbm [shape: f32[2,1,2,128], index: 2, kind: input, shape index: {}]   ;;  %s1204_s3 = inlined_call_operand.hbm [shape: f32[2,1,8,128], index: 3, kind: output, shape index: {}]  }
   0x1   :  { %1206 = sst [smem:[#allocation13_spill]] %s1201_s0 }
   0x2   :  { %1207 = sst [smem:[#allocation14_spill]] %s1202_s1 }
   0x3   :  { %1208 = sst [smem:[#allocation15_spill]] %s1203_s2 }
   0x4   :  { %8 = vsyncpa [#allocation4], 0 }
   0x5   :  { %10 = vsyncpa [#allocation4 + $0x1], 0 }
   0x6   :  { %11 = vsyncpa [#allocation7], 0 }
   0x7   :  { %13 = vsyncpa [#allocation7 + $0x1], 0 }
   0x8   :  { %14 = vsyncpa [#allocation5], 0 }
   0x9   :  { %16 = vsyncpa [#allocation5 + $0x1], 0  ;;  %s995_s12 = smov 0   ;;  %s997_s13 = smov 0  }
   0xa   :  { %s999_s14 = smov 0   ;;  %s1001_s15 = smov 0  }
   0xb   :  { %s1003_s16 = smov 0   ;;  %s1005_s17 = smov 0  }
   0xc LB: > { %s1026_s18 = sadd.s32 4294967295, %s965_s17   ;;  %s688_s19 = sadd.s32 4294967294, %s965_s17   ;;  %s965_s17 = sphi %s1005_s17, %s22_s17   ;;  %s961_s16 = sphi %s1003_s16, %s1224_s16   ;;  %s957_s15 = sphi %s1001_s15, %s1223_s15   ;;  %s953_s14 = sphi %s999_s14, %s1222_s14   ;;  %s949_s13 = sphi %s997_s13, %s1221_s13   ;;  %s945_s12 = sphi %s995_s12, %s1220_s12  }
   0xd   : > { %s41_s20 = sadd.s32 1, %s961_s16  ;;  %s52_s21 = sadd.s32 1, %s953_s14 }
   0xe   : > { %p43_p0 = scmp.ge.s32.totalorder %s41_s20, 2  ;;  %p59_p1 = scmp.ne.s32.totalorder %s953_s14, %s949_s13 }
   0xf   : > { %p60_p2 = scmp.eq.s32.totalorder %s965_s17, 0  ;;  %p65_p3 = scmp.ne.s32.totalorder %s949_s13, %s945_s12 }
  0x10   : > { %s1226_s20 = smov (%p43_p0, %s41_s20), 0  ;;  %p66_p5 = scmp.eq.s32.totalorder %s1026_s18, 0 }
  0x11   : > { %p1038_p4 = por %p60_p2, %p59_p1  ;;  %s47_s23 = ssub.s32 %s961_s16, %s1226_s20 }
  0x12   : > { %p151_p6 = scmp.eq.s32.totalorder %s1026_s18, 1  ;;  %p50_p7 = scmp.eq.s32.totalorder %s47_s23, 0 }
  0x13   : > { %p1046_p8 = por %p66_p5, %p65_p3  ;;  %p157_p10 = scmp.eq.s32.totalorder %s688_s19, 1 }
  0x14   : > { %p1050_p9 = por %p151_p6, %p59_p1  ;;  %p733_p13 = scmp.lt.s32.totalorder %s965_s17, 2 }
  0x15   : > { %s1055_s26 = scalar_select %p50_p7, %s953_s14, %s52_s21  }
  0x16   : > { %p1057_p11 = por %p157_p10, %p65_p3  ;;  %s1064_s28 = sand.u32 1, %s953_s14  }
  0x17   : > { %s200_s29 = sand.u32 1, %s965_s17   ;;  %s1205_s30 = sshll.u32 %s1064_s28, 1 }
  0x18   : > { %p1070_p0 = pnand %p733_p13, %p1038_p4  ;;  %s695_s5 = sshll.u32 %s961_s16, 5 }
  0x19   : > { %s1214_s1 = sld [smem:[#allocation14_spill]]  ;;  %s204_s9 = scalar_lea.vmem [#allocation6], %s1205_s30 }
  0x1a   : > { %s213_s10 = sshll.u32 %s204_s9, 4  ;;  %s1215_s2 = sld [smem:[#allocation15_spill]]  ;;  %s214_s10 = int_to_ptr.vmem [resolvable:$true] %s213_s10 }
  0x1b   : > { %s1085_s22 = scalar_lea.sflag [#allocation7], %s200_s29  ;;  %p799_p1 = pneg %p1070_p0 }
  0x1c   : > { %s810_s23 = scalar_lea.vmem %s214_s10, 32  ;;  %s967_s6 = smov [#allocation6]  }
  0x1d   : > { %p811_p2 = scmp.ne.s32.totalorder %s214_s10, %s810_s23  ;;  %s815_s7 = sshll.u32 %s967_s6, 4  ;;  %s816_s7 = int_to_ptr.vmem [resolvable:$false] %s815_s7 }
  0x1e   : > { %s817_s9 = scalar_lea.vmem %s816_s7, 64  ;;  %p818_p5 = scmp.lt.s32.totalorder %s214_s10, %s816_s7 }
  0x1f   : > { %s211_s8 = scalar_lea.hbm %s1214_s1, %s695_s5  ;;  %p813_p3 = pnand %p811_p2, %p799_p1 }
  0x20   : > { %s1083_s21 = scalar_lea.hbm %s1215_s2, %s695_s5  ;;  %p819_p6 = scmp.lt.s32.totalorder %s817_s9, %s810_s23 }
  0x21   : > { %p814_p4 = pneg %p813_p3 }
  0x22   : > { %p820_p7 = por %p819_p6, %p818_p5 }
  0x24   : > { %p821_p10 = pnand %p820_p7, %p814_p4 }
  0x26   : > { %824 = shalt.err (!%p821_p10)
}
  0x27   : > { %725 = dma.hbm_to_vmem [thread:$0]  (!%p1070_p0), %s211_s8, 32, %s214_s10, %s1085_s22  }
  0x28   : > { %p698_p13 = scmp.ge.s32.totalorder %s965_s17, 1  ;;  %p238_p2 = scmp.lt.s32.totalorder %s965_s17, 3 }
  0x29   : > { %s691_s5 = sshll.u32 %s1064_s28, 3  ;;  %s710_s11 = sshll.u32 %s961_s16, 7 }
  0x2a   : > { %p1097_p3 = pnand %p698_p13, %p238_p2  ;;  %s1217_s0 = sld [smem:[#allocation13_spill]] }
  0x2b   : > { %s181_s7 = scalar_lea.vmem [#allocation3], %s691_s5  ;;  %s178_s30 = scalar_lea.sflag [#allocation4], %s1064_s28 }
  0x2c   : > { %s190_s9 = sshll.u32 %s181_s7, 4  ;;  %s968_s8 = smov [#allocation3]   ;;  %s191_s9 = int_to_ptr.vmem [resolvable:$true] %s190_s9 }
  0x2d   : > { %s838_s1 = scalar_lea.vmem %s191_s9, 128  ;;  %s843_s10 = sshll.u32 %s968_s8, 4  ;;  %s844_s10 = int_to_ptr.vmem [resolvable:$false] %s843_s10 }
  0x2e   : > { %p839_p4 = scmp.ne.s32.totalorder %s191_s9, %s838_s1  ;;  %s845_s2 = scalar_lea.vmem %s844_s10, 256 }
  0x2f   : > { %p846_p7 = scmp.lt.s32.totalorder %s191_s9, %s844_s10  ;;  %p847_p10 = scmp.lt.s32.totalorder %s845_s2, %s838_s1 }
  0x30   : > { %s189_s6 = scalar_lea.hbm %s1217_s0, %s710_s11  ;;  %p841_p5 = pnand %p839_p4, %p799_p1 }
  0x31   : > { %p848_p13 = por %p847_p10, %p846_p7 }
  0x32   : > { %p842_p6 = pneg %p841_p5 }
  0x34   : > { %p849_p2 = pnand %p848_p13, %p842_p6 }
  0x36   : > { %852 = shalt.err (!%p849_p2)
}
  0x37   : > { %s969_s11 = smov 32   ;;  %s970_s5 = smov 2  }
  0x38   : > { %722 = dma.hbm_to_vmem [thread:$0]  (!%p1070_p0), %s189_s6, 128, %s191_s9, %s178_s30, %s969_s11, %s969_s11, %s970_s5  }
  0x39   : > { %s1218_s19 = sshll.u32 %s1064_s28, 1  ;;  %s971_s1 = smov [#allocation8]  }
  0x3a   : > { %s224_s23 = scalar_lea.vmem [#allocation8], %s1218_s19  ;;  %s871_s2 = sshll.u32 %s971_s1, 4  ;;  %s872_s2 = int_to_ptr.vmem [resolvable:$false] %s871_s2 }
  0x3b   : > { %s233_s7 = sshll.u32 %s224_s23, 4  ;;  %s873_s8 = scalar_lea.vmem %s872_s2, 64  ;;  %s234_s7 = int_to_ptr.vmem [resolvable:$true] %s233_s7 }
  0x3c   : > { %s866_s0 = scalar_lea.vmem %s234_s7, 32  ;;  %p874_p6 = scmp.lt.s32.totalorder %s234_s7, %s872_s2 }
  0x3d   : > { %p867_p4 = scmp.ne.s32.totalorder %s234_s7, %s866_s0  ;;  %p875_p7 = scmp.lt.s32.totalorder %s873_s8, %s866_s0 }
  0x3f   : > { %p869_p5 = pnand %p867_p4, %p799_p1  ;;  %p876_p10 = por %p875_p7, %p874_p6 }
  0x41   : > { %p870_p12 = pneg %p869_p5 }
  0x43   : > { %p877_p13 = pnand %p876_p10, %p870_p12 }
  0x45   : > { %880 = shalt.err (!%p877_p13)
}
  0x46   : > { %728 = dma.hbm_to_vmem [thread:$0]  (!%p1070_p0), %s1083_s21, 32, %s234_s7, %s1085_s22  }
  0x47   : > { %242 = sbr.rel (%p1097_p3) target bundleno = 183 (0xb7), region = 32  ;;  %s1124_s28 = sand.u32 (!%p1097_p3), 1, %s949_s13  }
  0x48   : > { %s699_s30 = sshll.u32 (!%p1097_p3), %s1124_s28, 3  ;;  %s245_s0 = scalar_lea.sflag (!%p1097_p3), [#allocation4], %s1124_s28 }
  0x49   : > { %s248_s6 = scalar_lea.vmem (!%p1097_p3), [#allocation3], %s699_s30 }
  0x4c   : > { %932 = dma.done.wait (%p1046_p8), %s245_s0, 128  }
  0x4d   : > { %934 = vsyncadd (%p1046_p8), %s245_s0, 4294967168  ;;  %s253_s4 = sand.u32 1, %s1026_s18   ;;  %s700_s21 = sshll.u32 %s1124_s28, 1 }
  0x4e   : > { %s254_s22 = scalar_lea.sflag [#allocation7], %s253_s4  ;;  %s1138_s29 = scalar_lea.vmem [#allocation6], %s700_s21 }
  0x4f   : > { %936 = dma.done.wait (%p1046_p8), %s254_s22, 64  }
  0x50   : > { %938 = vsyncadd (%p1046_p8), %s254_s22, 4294967232  ;;  %v972_v0 = vmov 0.0   ;;  %v316_v1 = vld [vmem:[%s248_s6] sm:$0x3]  ;;  %v703_v2 = vld [vmem:[%s248_s6 + $0x2] sm:$0x3]  ;;  %v496_v36 = vlaneseq }
  0x51   : > { %306 = vst [vmem:[#allocation2] sm:$0x1] %v972_v0  ;;  %307 = vst [vmem:[#allocation2 + $0x1] sm:$0x1] %v972_v0  ;;  %v704_v3 = vld [vmem:[%s248_s6 + $0x4] sm:$0x3]  ;;  %v323_v4 = vmax.f32 %v316_v1, %v703_v2 }
  0x52   : > { %308 = vst [vmem:[#allocation2 + $0x2] sm:$0x1] %v972_v0  ;;  %309 = vst [vmem:[#allocation2 + $0x3] sm:$0x1] %v972_v0  ;;  %v705_v5 = vld [vmem:[%s248_s6 + $0x6] sm:$0x3] }
  0x53   : > { %310 = vst [vmem:[#allocation2 + $0x4] sm:$0x1] %v972_v0  ;;  %311 = vst [vmem:[#allocation2 + $0x5] sm:$0x1] %v972_v0  ;;  %v324_v6 = vmax.f32 %v323_v4, %v704_v3  ;;  %v314_v23 = vld [vmem:[%s1138_s29] sm:$0x3] }
  0x54   : > { %312 = vst [vmem:[#allocation2 + $0x6] sm:$0x1] %v972_v0  ;;  %313 = vst [vmem:[#allocation2 + $0x7] sm:$0x1] %v972_v0  ;;  %s266_s18 = scalar_lea.vmem [#allocation8], %s700_s21  ;;  %vm343_vm0 = vcmp.eq.s32.totalorder %v314_v23, 0 }
  0x55   : > { %v325_v7 = vmax.f32 %v324_v6, %v705_v5  ;;  %v315_v24 = vld [vmem:[%s266_s18] sm:$0x3]  ;;  %vm366_vm1 = vcmp.eq.s32.totalorder %v314_v23, 1  ;;  %vm388_vm2 = vcmp.eq.s32.totalorder %v314_v23, 2  ;;  %vm410_vm3 = vcmp.eq.s32.totalorder %v314_v23, 3  ;;  %s298_s24 = scalar_lea.vmem [#allocation9], %s699_s30 }
  0x56   : > { %v344_v26 = vsel %vm343_vm0, %v315_v24, 0.0  ;;  %v367_v27 = vsel %vm366_vm1, %v315_v24, 0.0  ;;  %v389_v28 = vsel %vm388_vm2, %v315_v24, 0.0  ;;  %v411_v29 = vsel %vm410_vm3, %v315_v24, 0.0  ;;  %s555_s9 = sshll.u32 %s298_s24, 4  ;;  %s707_s10 = sshll.u32 %s957_s15, 7  ;;  %s556_s9 = int_to_ptr.vmem [resolvable:$true] %s555_s9 }
  0x57   : > { %v326_v8 = vsub.f32 %v316_v1, %v325_v7  ;;  %v329_v9 = vsub.f32 %v703_v2, %v325_v7  ;;  %v333_v10 = vsub.f32 %v704_v3, %v325_v7  ;;  %v337_v11 = vsub.f32 %v705_v5, %v325_v7  ;;  %s553_s19 = scalar_lea.hbm %s1204_s3, %s707_s10  ;;  %s541_s23 = scalar_lea.sflag [#allocation5], %s1124_s28 }
  0x58   : > { %vm348_vm4 = vcmask 1041408   ;;  %v973_v34 = vmov 1966171168   ;;  %s881_s7 = scalar_lea.vmem %s556_s9, 128  ;;  %s974_s1 = smov [#allocation9]  }
  0x59   : > { %v327_v12 = vmul.f32 1.442695, %v326_v8  ;;  %v330_v13 = vmul.f32 1.442695, %v329_v9  ;;  %v334_v14 = vmul.f32 1.442695, %v333_v10  ;;  %v1147_v35 = vunpack.c.l.s4 %v973_v34  ;;  %p882_p8 = scmp.ne.s32.totalorder %s556_s9, %s881_s7 }
  0x5a   : > { %v338_v15 = vmul.f32 1.442695, %v337_v11  ;;  %s885_s2 = sshll.u32 %s974_s1, 4  ;;  %s886_s2 = int_to_ptr.vmem [resolvable:$false] %s885_s2 }
  0x5b   : > { %787 = vpow2.f32 %v327_v12  ;;  %p883_p12 = pnand %p882_p8, %p1050_p9  ;;  %s887_s8 = scalar_lea.vmem %s886_s2, 256 }
  0x5c   : > { %789 = vpow2.f32 %v330_v13  ;;  %p888_p1 = scmp.lt.s32.totalorder %s556_s9, %s886_s2  ;;  %p889_p3 = scmp.lt.s32.totalorder %s887_s8, %s881_s7 }
  0x5d   : > { %791 = vpow2.f32 %v334_v14  ;;  %p884_p0 = pneg %p883_p12 }
  0x5e   : > { %793 = vpow2.f32 %v338_v15  ;;  %p890_p2 = por %p889_p3, %p888_p1 }
  0x60   : > { %p891_p4 = pnand %p890_p2, %p884_p0 }
  0x68   : > { %v788_v16 = vpop.eup %787 }
  0x69   : > { %v790_v17 = vpop.eup %789 }
  0x6a   : > { %v792_v18 = vpop.eup %791  ;;  %v332_v19 = vadd.f32 %v790_v17, %v788_v16 }
  0x6b   : > { %v794_v20 = vpop.eup %793 }
  0x6c   : > { %v336_v21 = vadd.f32 %v792_v18, %v332_v19 }
  0x6e   : > { %v340_v22 = vadd.f32 %v794_v20, %v336_v21  ;;  %v431_v21 = vld [vmem:[#allocation2] sm:$0x1] }
  0x70   : > { %795 = vrcp.f32 %v340_v22  ;;  %v439_v22 = vld [vmem:[#allocation2 + $0x1] sm:$0x1] }
  0x7d   : > { %v796_v25 = vpop.eup %795 }
  0x7e   : > { %v342_v30 = vmul.f32 %v796_v25, %v788_v16  ;;  %v365_v31 = vmul.f32 %v796_v25, %v790_v17  ;;  %v387_v32 = vmul.f32 %v796_v25, %v792_v18  ;;  %v409_v33 = vmul.f32 %v796_v25, %v794_v20 }
  0x80   : > { %v345_v37 = vmul.f32 %v344_v26, %v342_v30  ;;  %v346_v38 = vmul.f32 %v342_v30, %v315_v24  ;;  %v368_v39 = vmul.f32 %v367_v27, %v365_v31  ;;  %v369_v40 = vmul.f32 %v365_v31, %v315_v24  ;;  %v447_v31 = vld [vmem:[#allocation2 + $0x2] sm:$0x1] }
  0x81   : > { %v390_v41 = vmul.f32 %v389_v28, %v387_v32  ;;  %v391_v42 = vmul.f32 %v387_v32, %v315_v24  ;;  %v412_v43 = vmul.f32 %v411_v29, %v409_v33  ;;  %v413_v44 = vmul.f32 %v409_v33, %v315_v24  ;;  %v435_v32 = vld [vmem:[#allocation2 + $0x4] sm:$0x1]  ;;  %v443_v33 = vld [vmem:[#allocation2 + $0x5] sm:$0x1] }
  0x82   : > { %v349_v45 = vsel %vm348_vm4, %v345_v37, 0.0  ;;  %v347_v46 = vadd.f32 %v346_v38, %v344_v26  ;;  %v371_v47 = vsel %vm348_vm4, %v368_v39, 0.0  ;;  %v370_v48 = vadd.f32 %v369_v40, %v367_v27 }
  0x83   : > { %v350_v49 = vrot.slane %v349_v45, 4  ;;  %v372_v50 = vrot.slane %v371_v47, 4  ;;  %v393_v51 = vsel %vm348_vm4, %v390_v41, 0.0  ;;  %v392_v52 = vadd.f32 %v391_v42, %v389_v28 }
  0x84   : > { %v357_v53 = vsel %vm348_vm4, %v347_v46, 0.0  ;;  %v379_v54 = vsel %vm348_vm4, %v370_v48, 0.0  ;;  %v394_v55 = vrot.slane %v393_v51, 4  ;;  %v415_v56 = vsel %vm348_vm4, %v412_v43, 0.0 }
  0x85   : > { %v351_v57 = vadd.f32 %v350_v49, %v349_v45  ;;  %v358_v58 = vrot.slane %v357_v53, 4  ;;  %v373_v59 = vadd.f32 %v372_v50, %v371_v47  ;;  %v380_v60 = vrot.slane %v379_v54, 4 }
  0x86   : > { %v395_v61 = vadd.f32 %v394_v55, %v393_v51  ;;  %v401_v62 = vsel %vm348_vm4, %v392_v52, 0.0  ;;  %v416_v63 = vrot.slane %v415_v56, 4  ;;  %v414_v0 = vadd.f32 %v413_v44, %v411_v29  ;;  %v455_v44 = vld [vmem:[#allocation2 + $0x3] sm:$0x1]  ;;  %v451_v51 = vld [vmem:[#allocation2 + $0x6] sm:$0x1] }
  0x87   : > { %v352_v1 = vrot.slane %v351_v57, 2  ;;  %v359_v2 = vadd.f32 %v358_v58, %v357_v53  ;;  %v374_v3 = vrot.slane %v373_v59, 2  ;;  %v381_v4 = vadd.f32 %v380_v60, %v379_v54  ;;  %v459_v55 = vld [vmem:[#allocation2 + $0x7] sm:$0x1] }
  0x88   : > { %v396_v5 = vrot.slane %v395_v61, 2  ;;  %v402_v6 = vrot.slane %v401_v62, 4  ;;  %v417_v7 = vadd.f32 %v416_v63, %v415_v56  ;;  %v423_v8 = vsel %vm348_vm4, %v414_v0, 0.0 }
  0x89   : > { %v353_v9 = vadd.f32 %v352_v1, %v351_v57  ;;  %v360_v10 = vrot.slane %v359_v2, 2  ;;  %v375_v11 = vadd.f32 %v374_v3, %v373_v59  ;;  %v382_v12 = vrot.slane %v381_v4, 2 }
  0x8a   : > { %v397_v13 = vadd.f32 %v396_v5, %v395_v61  ;;  %v403_v14 = vadd.f32 %v402_v6, %v401_v62  ;;  %v418_v15 = vrot.slane %v417_v7, 2  ;;  %v424_v16 = vrot.slane %v423_v8, 4 }
  0x8b   : > { %v354_v17 = vrot.slane %v353_v9, 1  ;;  %v361_v18 = vadd.f32 %v360_v10, %v359_v2  ;;  %v376_v19 = vrot.slane %v375_v11, 1  ;;  %v383_v20 = vadd.f32 %v382_v12, %v381_v4 }
  0x8c   : > { %v398_v23 = vrot.slane %v397_v13, 1  ;;  %v404_v24 = vrot.slane %v403_v14, 2  ;;  %v419_v25 = vadd.f32 %v418_v15, %v417_v7  ;;  %v425_v26 = vadd.f32 %v424_v16, %v423_v8 }
  0x8d   : > { %v355_v27 = vadd.f32 %v354_v17, %v353_v9  ;;  %v362_v28 = vrot.slane %v361_v18, 1  ;;  %v377_v29 = vadd.f32 %v376_v19, %v375_v11  ;;  %v384_v30 = vrot.slane %v383_v20, 1 }
  0x8e   : > { %v399_v34 = vadd.f32 %v398_v23, %v397_v13  ;;  %v405_v37 = vadd.f32 %v404_v24, %v403_v14  ;;  %v420_v38 = vrot.slane %v419_v25, 1  ;;  %v426_v39 = vrot.slane %v425_v26, 2 }
  0x8f   : > { %v432_v40 = vadd.f32 %v431_v21, %v355_v27  ;;  %v363_v41 = vadd.f32 %v362_v28, %v361_v18  ;;  %v440_v42 = vadd.f32 %v439_v22, %v377_v29  ;;  %v385_v43 = vadd.f32 %v384_v30, %v383_v20 }
  0x90   : > { %v448_v45 = vadd.f32 %v447_v31, %v399_v34  ;;  %v406_v46 = vrot.slane %v405_v37, 1  ;;  %v421_v47 = vadd.f32 %v420_v38, %v419_v25  ;;  %v427_v48 = vadd.f32 %v426_v39, %v425_v26 }
  0x91   : > { %433 = vst [vmem:[#allocation2] sm:$0x1] %v432_v40  ;;  %v436_v49 = vadd.f32 %v435_v32, %v363_v41  ;;  %441 = vst [vmem:[#allocation2 + $0x1] sm:$0x1] %v440_v42  ;;  %v444_v50 = vadd.f32 %v443_v33, %v385_v43  ;;  %v495_v58 = vunpack.c.0.s8 %v1147_v35  ;;  %v497_v59 = vshrl.u32 %v496_v36, 7 }
  0x92   : > { %449 = vst [vmem:[#allocation2 + $0x2] sm:$0x1] %v448_v45  ;;  %v407_v52 = vadd.f32 %v406_v46, %v405_v37  ;;  %v456_v53 = vadd.f32 %v455_v44, %v421_v47  ;;  %v428_v54 = vrot.slane %v427_v48, 1 }
  0x93   : > { %437 = vst [vmem:[#allocation2 + $0x4] sm:$0x1] %v436_v49  ;;  %445 = vst [vmem:[#allocation2 + $0x5] sm:$0x1] %v444_v50  ;;  %v498_v63 = vsub.s32 %v495_v58, %v497_v59 }
  0x94   : > { %v452_v56 = vadd.f32 %v451_v51, %v407_v52  ;;  %457 = vst [vmem:[#allocation2 + $0x3] sm:$0x1] %v456_v53  ;;  %v429_v57 = vadd.f32 %v428_v54, %v427_v48 }
  0x96   : > { %453 = vst [vmem:[#allocation2 + $0x6] sm:$0x1] %v452_v56  ;;  %v460_v60 = vadd.f32 %v459_v55, %v429_v57 }
  0x98   : > { %461 = vst [vmem:[#allocation2 + $0x7] sm:$0x1] %v460_v60  ;;  %v465_v61 = vld [vmem:[#allocation2] sm:$0x1]  ;;  %v466_v62 = vld [vmem:[#allocation2 + $0x1] sm:$0x1] }
  0x99   : > { %v467_v0 = vld [vmem:[#allocation2 + $0x2] sm:$0x1]  ;;  %v489_v1 = vcombine.low %v465_v61, %v466_v62 }
  0x9a   : > { %v469_v2 = vld [vmem:[#allocation2 + $0x4] sm:$0x1]  ;;  %v470_v3 = vld [vmem:[#allocation2 + $0x5] sm:$0x1] }
  0x9b   : > { %v468_v4 = vld [vmem:[#allocation2 + $0x3] sm:$0x1]  ;;  %v491_v6 = vcombine.low %v469_v2, %v470_v3  ;;  %v499_v7 = vrot.slane %v489_v1, %v498_v63 }
  0x9c   : > { %v490_v5 = vcombine.low %v467_v0, %v468_v4 }
  0x9d   : > { %v471_v8 = vld [vmem:[#allocation2 + $0x6] sm:$0x1]  ;;  %v513_v10 = vrot.slane %v491_v6, %v498_v63 }
  0x9e   : > { %v506_v35 = vrot.slane %v490_v5, %v498_v63 }
  0x9f   : > { %v472_v36 = vld [vmem:[#allocation2 + $0x7] sm:$0x1] }
  0xa0   : > { %v492_v9 = vcombine.low %v471_v8, %v472_v36  ;;  %v521_v11 = vcombine.low %v499_v7, %v506_v35 }
  0xa2   : > { %v520_v12 = vrot.slane %v492_v9, %v498_v63  ;;  %v529_v14 = vrot.slane %v521_v11, %v498_v63 }
  0xa4   : > { %v522_v13 = vcombine.low %v513_v10, %v520_v12 }
  0xa6   : > { %v536_v15 = vrot.slane %v522_v13, %v498_v63 }
  0xa8   : > { %v537_v16 = vcombine.low %v529_v14, %v536_v15 }
  0xaa   : > { %539 = vst [vmem:[%s298_s24] sm:$0xff] %v537_v16 }
  0xab   : > { %894 = shalt.err (!%p891_p4)
}
  0xac   : > { %s895_s15 = scalar_lea.hbm %s553_s19, 128  ;;  %s899_s0 = scalar_lea.hbm %s1204_s3, 256 }
  0xad   : > { %p896_p5 = scmp.ne.s32.totalorder %s553_s19, %s895_s15  ;;  %p900_p10 = scmp.lt.s32.totalorder %s553_s19, %s1204_s3 }
  0xae   : > { %p901_p13 = scmp.lt.s32.totalorder %s899_s0, %s895_s15 }
  0xaf   : > { %p897_p6 = pnand %p896_p5, %p1050_p9 }
  0xb0   : > { %p902_p8 = por %p901_p13, %p900_p10 }
  0xb1   : > { %p898_p7 = pneg %p897_p6 }
  0xb3   : > { %p903_p12 = pnand %p902_p8, %p898_p7 }
  0xb5   : > { %906 = shalt.err (!%p903_p12)
}
  0xb6   : > { %717 = dma.vmem_to_hbm [thread:$0]  (%p1050_p9), %s556_s9, 128, %s553_s19, %s541_s23  }
  0xb7 PF: > { %s567_s21 = sand.u32 1, %s945_s12   ;;  %p1219_p0 = scmp.ge.s32.totalorder %s965_s17, 2 }
  0xb8   : > { %s568_s22 = scalar_lea.sflag [#allocation5], %s567_s21 }
  0xb9   : > { %p730_p1 = pnand %p1219_p0, %p1057_p11 }
  0xbb   : > { %p731_p3 = pneg %p730_p1 }
  0xbd   : > { %940 = dma.done.wait (%p731_p3), %s568_s22, 128  }
  0xbe   : > { %942 = vsyncadd (%p731_p3), %s568_s22, 4294967168  ;;  %s22_s17 = sadd.s32 1, %s965_s17   ;;  %s1220_s12 = smov %s949_s13 }
  0xbf   : > { %p19_p2 = scmp.ge.s32.totalorder %s22_s17, 4   ;;  %s1221_s13 = smov %s953_s14 }
  0xc0   : > { %s1222_s14 = smov %s1055_s26  ;;  %s1223_s15 = smov %s961_s16 }
  0xc1   : > { %s1224_s16 = smov %s1226_s20  ;;  %21 = sbr.rel (!%p19_p2) target bundleno = 12 (0xc), region = 119 }
  0xc6   :  { %573 = vsyncpa [#allocation4], 1 }
  0xc7   :  { %575 = vsyncpa [#allocation4 + $0x1], 1 }
  0xc8   :  { %576 = vsyncpa [#allocation7], 1 }
  0xc9   :  { %578 = vsyncpa [#allocation7 + $0x1], 1 }
  0xca   :  { %579 = vsyncpa [#allocation5], 1 }
  0xcb   :  { %581 = vsyncpa [#allocation5 + $0x1], 1 }

</bundles_post_ra>
